<compile_context>
chip_gen: v7x
topology: tpu7x:2x2x1
jax: 0.10.0
libtpu: 0.0.40
codegen_flags: <defaults>
</compile_context>

<pallas_src>
import functools

import jax
import jax.numpy as jnp
from jax.experimental import pallas as pl
from jax.experimental.pallas import tpu as pltpu


# ----------------------------------------------------------------------------
# Kernels
# ----------------------------------------------------------------------------
def _rb_kernel_resident_w(x_ref, w_ref, b_ref, o_ref, *, valid_d):
    """Single feature block: full (padded) W resident in VMEM. Grid = (i,)."""
    x = x_ref[...]                                   # (tm, Dp) f32
    h = jnp.tanh(x)                                  # Layer1 (EUP)
    if valid_d != x.shape[-1]:
        # Lanes >= valid_d of this block are out-of-bounds reads (garbage);
        # zero them before the contraction (W's padded rows are zero, but this
        # guards against NaN/Inf garbage).  Static mask: valid_d is a Python int.
        lane = jax.lax.broadcasted_iota(jnp.int32, x.shape, 1)
        h = jnp.where(lane < valid_d, h, 0.0)
    h = h.astype(w_ref.dtype)                        # optional bf16 MXU operands
    y = jnp.dot(h, w_ref[...], preferred_element_type=jnp.float32) + b_ref[...]
    o_ref[...] = (x + jnp.tanh(y)).astype(o_ref.dtype)   # Layer2 + residual


def _rb_kernel_tiled_w(xw_ref, xn_ref, w_ref, b_ref, o_ref, h_ref):
    """Feature-tiled W. Grid = (i batch tiles, j feature tiles), j innermost.

    xw_ref: (tm, D)  activations, block index (i, 0) -> VMEM-resident across j.
    xn_ref: (tm, tn) same rows, feature slice j (static block -> no dynamic
            lane slicing inside the kernel).
    w_ref : (D, tn)  weight tile, pipelined by BlockSpec.
    h_ref : (tm, D)  scratch caching tanh(x) for this batch tile.
    """
    @pl.when(pl.program_id(1) == 0)
    def _():
        h_ref[...] = jnp.tanh(xw_ref[...]).astype(h_ref.dtype)

    y = jnp.dot(h_ref[...], w_ref[...], preferred_element_type=jnp.float32)
    y = y + b_ref[...]
    o_ref[...] = (xn_ref[...] + jnp.tanh(y)).astype(o_ref.dtype)


# ----------------------------------------------------------------------------
# One-time parameter preparation (hoisted out of the per-call path)
# ----------------------------------------------------------------------------
def prepare_params(w, b, *, mxu_dtype=jnp.float32):
    """w: (out, in) PyTorch Linear weight; b: (out,) bias.

    Returns (w_t, b2): weight transposed to (in, out) and zero-padded so the
    lane axis is a multiple of 128 (padding is exact for this op: tanh(0)=0,
    zero W rows/cols, zero bias), bias as (1, Dp) f32.  mxu_dtype=jnp.bfloat16
    trades the 1e-5 accuracy for ~3x MXU throughput on v6e/v7x.
    """
    d_out, d_in = w.shape
    assert d_out == d_in, "ResidualBlock Linear is square"
    dp = pl.cdiv(d_in, 128) * 128
    w_t = jnp.pad(w.T.astype(mxu_dtype), ((0, dp - d_in), (0, dp - d_out)))
    b2 = jnp.pad(b.astype(jnp.float32).reshape(1, -1), ((0, 0), (0, dp - d_out)))
    return w_t, b2


# ----------------------------------------------------------------------------
# Wrapper
# ----------------------------------------------------------------------------
def residual_block(x, w_t, b2, *, block_b=256, block_n=None):
    """out = x + tanh(tanh(x) @ W + b) for x of shape (B, D) f32.

    w_t / b2 must come from prepare_params (lane-padded to Dp = roundup(D,128)).
    """
    B, D = x.shape
    Dp = w_t.shape[1]
    assert w_t.shape == (Dp, Dp) and Dp % 128 == 0 and Dp >= D
    w_isz = jnp.dtype(w_t.dtype).itemsize

    # ---- generation-aware VMEM budget (128 MiB v5e/v6e, 64 MiB v7x) --------
    try:
        phys_vmem = int(pltpu.get_tpu_info().vmem_capacity_bytes)
    except Exception:
        phys_vmem = 64 << 20                     # conservative: v7x per-core VMEM
    budget = phys_vmem * 3 // 4

    # ---- feature (output) tiling -------------------------------------------
    # N-tile W only when keeping it fully resident would be expensive; needs a
    # lane-aligned D so the residual x slice is a clean static block.
    if block_n is not None:
        tn = int(block_n)
        assert D == Dp and D % tn == 0 and (tn % 128 == 0 or tn == D)
    elif D == Dp and 2 * Dp * Dp * w_isz > budget // 3:
        tn = next(t for t in (512, 256, 128) if Dp % t == 0)
    else:
        tn = Dp
        # TODO(synk): also N-tile the padded weight for very large non-128-aligned D.
    nn = Dp // tn
    tiled = nn > 1

    # ---- batch tiling (no batch padding: Pallas masks the partial last tile)
    tm = int(min(block_b, pl.cdiv(B, 8) * 8))
    tm = max(8, (tm // 8) * 8)

    def vmem_est(tm_):
        if tiled:
            return (2 * tm_ * Dp * 4            # x wide (resident across j)
                    + 2 * tm_ * tn * 4          # x feature slices
                    + 2 * Dp * tn * w_isz       # W tiles (pipelined)
                    + 2 * tn * 4                # bias tiles
                    + 2 * tm_ * tn * 4          # out tiles
                    + tm_ * Dp * w_isz)         # tanh(x) scratch
        return (2 * tm_ * Dp * 4 + 2 * Dp * Dp * w_isz
                + 2 * Dp * 4 + 2 * tm_ * Dp * 4)

    while vmem_est(tm) > budget and tm > 8:      # shrink instead of under-declaring
        tm = max(8, (tm // 2 + 7) // 8 * 8)
    vmem_limit = int(max(vmem_est(tm) + (2 << 20), 4 << 20))

    nb = pl.cdiv(B, tm)
    cost = pl.CostEstimate(
        flops=2 * B * Dp * Dp,
        transcendentals=2 * B * Dp,
        bytes_accessed=4 * 2 * B * D + Dp * Dp * w_isz + 4 * Dp,
    )
    out_shape = jax.ShapeDtypeStruct((B, D), x.dtype)

    if not tiled:
        kernel = functools.partial(_rb_kernel_resident_w, valid_d=D)
        grid_spec = pltpu.PrefetchScalarGridSpec(
            num_scalar_prefetch=0,
            grid=(nb,),
            in_specs=[
                pl.BlockSpec((tm, Dp), lambda i: (i, 0)),   # x (OOB lanes masked in-kernel)
                pl.BlockSpec((Dp, Dp), lambda i: (0, 0)),   # W: constant block -> resident
                pl.BlockSpec((1, Dp), lambda i: (0, 0)),    # bias: resident
            ],
            out_specs=pl.BlockSpec((tm, Dp), lambda i: (i, 0)),
        )
        dims = ("parallel",)
        args = (x, w_t, b2)
    else:
        kernel = _rb_kernel_tiled_w
        grid_spec = pltpu.PrefetchScalarGridSpec(
            num_scalar_prefetch=0,
            grid=(nb, nn),
            in_specs=[
                pl.BlockSpec((tm, Dp), lambda i, j: (i, 0)),  # x wide: resident across j
                pl.BlockSpec((tm, tn), lambda i, j: (i, j)),  # x slice for the residual
                pl.BlockSpec((Dp, tn), lambda i, j: (0, j)),  # W: N-tiled, pipelined
                pl.BlockSpec((1, tn), lambda i, j: (0, j)),   # bias tile
            ],
            out_specs=pl.BlockSpec((tm, tn), lambda i, j: (i, j)),
            scratch_shapes=[pltpu.VMEM((tm, Dp), w_t.dtype)],  # cached tanh(x)
        )
        dims = ("parallel", "arbitrary")
        args = (x, x, w_t, b2)

    return pl.pallas_call(
        kernel,
        out_shape=out_shape,
        grid_spec=grid_spec,
        compiler_params=pltpu.CompilerParams(
            dimension_semantics=dims,
            vmem_limit_bytes=vmem_limit,
        ),
        cost_estimate=cost,
    )(*args)


# ----------------------------------------------------------------------------
# Reference + harness
# ----------------------------------------------------------------------------
def reference(x, w, b):
    """Plain-XLA ResidualBlock: x + tanh(Linear(tanh(x)))."""
    return x + jnp.tanh(jnp.tanh(x) @ w.T + b[None, :])


if __name__ == "__main__":
    def make_case(key, batch, size):
        kx, kw, kb = jax.random.split(key, 3)
        x = jax.random.normal(kx, (batch, size), dtype=jnp.float32)
        bound = 1.0 / jnp.sqrt(jnp.float32(size))      # nn.Linear default init range
        w = jax.random.uniform(kw, (size, size), jnp.float32, -bound, bound)  # (out, in)
        b = jax.random.uniform(kb, (size,), jnp.float32, -bound, bound)
        return x, w, b

    k1, k2 = jax.random.split(jax.random.PRNGKey(0))

    # Case 1: the module's native tiny shape (batch=8, _size=32).
    # At this size the kernel is pure launch overhead -- correctness check only.
    x, w, b = make_case(k1, 8, 32)
    w_t, b2 = prepare_params(w, b)
    out = jax.block_until_ready(residual_block(x, w_t, b2))
    assert out.shape == x.shape
    assert jnp.allclose(out, reference(x, w, b), atol=1e-5, rtol=1e-5), "case 1 mismatch"

    # Case 2: lane-aligned D, forced N-tiling of W, partial last batch tile
    # (exercises pipelined weight DMA, the tanh(x) scratch and boundary masking).
    x, w, b = make_case(k2, 200, 256)
    w_t, b2 = prepare_params(w, b)
    out = jax.block_until_ready(residual_block(x, w_t, b2, block_b=128, block_n=128))
    assert out.shape == x.shape
    assert jnp.allclose(out, reference(x, w, b), atol=1e-4, rtol=1e-4), "case 2 mismatch"

    print("KERNEL_OK")
</pallas_src>

<mosaic_0001>
module attributes {stable_mosaic.version = 11 : i64} {
  func.func @_rb_kernel_resident_w(%arg0: i32, %arg1: memref<8x128xf32, #tpu.memory_space<vmem>>, %arg2: memref<128x128xf32, #tpu.memory_space<vmem>>, %arg3: memref<1x128xf32, #tpu.memory_space<vmem>>, %arg4: memref<8x128xf32, #tpu.memory_space<vmem>>) attributes {dimension_semantics = [#tpu.dimension_semantics<parallel>], iteration_bounds = array<i64: 1>, scalar_prefetch = 0 : i64, scratch_operands = 0 : i64, tpu.core_type = #tpu.core_type<tc>, window_params = [{transform_indices = @transform_0, window_bounds = array<i64: 8, 128>}, {pipeline_mode = #tpu.pipeline_mode<synchronous>, transform_indices = @transform_1, window_bounds = array<i64: 128, 128>}, {pipeline_mode = #tpu.pipeline_mode<synchronous>, transform_indices = @transform_2, window_bounds = array<i64: 1, 128>}, {transform_indices = @transform_3, window_bounds = array<i64: 8, 128>}]} {
    %c0 = arith.constant 0 : index
    %c0_0 = arith.constant 0 : index
    %0 = vector.load %arg1[%c0, %c0_0] : memref<8x128xf32, #tpu.memory_space<vmem>>, vector<8x128xf32>
    %1 = math.tanh %0 : vector<8x128xf32>
    %2 = tpu.iota {dimensions = array<i32: 1>} : vector<8x128xi32>
    %c32_i32 = arith.constant 32 : i32
    %3 = vector.broadcast %c32_i32 : i32 to vector<8x128xi32>
    %4 = arith.cmpi slt, %2, %3 : vector<8x128xi32>
    %cst = arith.constant 0.000000e+00 : f32
    %5 = vector.broadcast %cst : f32 to vector<8x128xf32>
    %6 = arith.select %4, %1, %5 : vector<8x128xi1>, vector<8x128xf32>
    %c0_1 = arith.constant 0 : index
    %c0_2 = arith.constant 0 : index
    %7 = vector.load %arg2[%c0_1, %c0_2] : memref<128x128xf32, #tpu.memory_space<vmem>>, vector<128x128xf32>
    %cst_3 = arith.constant dense<0.000000e+00> : vector<8x128xf32>
    %8 = tpu.matmul %6, %7, %cst_3 {dimension_numbers = #tpu.dot_dimension_numbers<[1], [0], [0], [1], [0, 0, 1, 1], [], []>} : vector<8x128xf32>, vector<128x128xf32>, vector<8x128xf32> -> vector<8x128xf32>
    %c0_4 = arith.constant 0 : index
    %c0_5 = arith.constant 0 : index
    %9 = vector.load %arg3[%c0_4, %c0_5] : memref<1x128xf32, #tpu.memory_space<vmem>>, vector<1x128xf32>
    %10 = vector.broadcast %9 : vector<1x128xf32> to vector<8x128xf32>
    %11 = arith.addf %8, %10 : vector<8x128xf32>
    %12 = math.tanh %11 : vector<8x128xf32>
    %13 = arith.addf %0, %12 : vector<8x128xf32>
    %c0_6 = arith.constant 0 : index
    %c0_7 = arith.constant 0 : index
    %14 = vector.load %arg4[%c0_6, %c0_7] : memref<8x128xf32, #tpu.memory_space<vmem>>, vector<8x128xf32>
    tpu.vector_store %arg4[%c0_6, %c0_7], %13 {strides = array<i32>} : memref<8x128xf32, #tpu.memory_space<vmem>>, vector<8x128xf32>,
    return
  }
  func.func @transform_0(%arg0: i32) -> (i32, i32) {
    %c0_i32 = arith.constant 0 : i32
    %c0_i32_0 = arith.constant 0 : i32
    return %arg0, %c0_i32 : i32, i32
  }
  func.func @transform_1(%arg0: i32) -> (i32, i32) {
    %c0_i32 = arith.constant 0 : i32
    %c0_i32_0 = arith.constant 0 : i32
    %c0_i32_1 = arith.constant 0 : i32
    return %c0_i32, %c0_i32_0 : i32, i32
  }
  func.func @transform_2(%arg0: i32) -> (i32, i32) {
    %c0_i32 = arith.constant 0 : i32
    %c0_i32_0 = arith.constant 0 : i32
    %c0_i32_1 = arith.constant 0 : i32
    return %c0_i32, %c0_i32_0 : i32, i32
  }
  func.func @transform_3(%arg0: i32) -> (i32, i32) {
    %c0_i32 = arith.constant 0 : i32
    %c0_i32_0 = arith.constant 0 : i32
    return %arg0, %c0_i32 : i32, i32
  }
}

</mosaic_0001>

<bundles_post_ra>
// kernel: tpu_custom_call.1
= control target key start
LH: loop header
LB: loop body
LE: loop exit
PB: predicated region body
PF: predicated region fallthrough
CT: control target
= control target key end

     0   :  { %8 = vsyncpa [#allocation3], 0  ;;  %s395_s0 = inlined_call_operand.hbm [shape: f32[8,32], index: 0, kind: input, shape index: {}]   ;;  %s396_s1 = inlined_call_operand.hbm [shape: f32[128,128], index: 1, kind: input, shape index: {}]   ;;  %s397_s2 = inlined_call_operand.vmem [shape: f32[1,128], index: 2, kind: input, shape index: {}]   ;;  %s398_s3 = inlined_call_operand.hbm [shape: f32[8,32], index: 3, kind: output, shape index: {}]  }
   0x1   :  { %9 = vsyncpa [#allocation6], 0 }
   0x2   :  { %10 = vsyncpa [#allocation4], 0  ;;  %s321_s12 = smov [#allocation2]   ;;  %s322_s14 = smov [#allocation5]  }
   0x3   :  { %s17_s13 = sshll.u32 %s321_s12, 4  ;;  %s26_s15 = sshll.u32 %s322_s14, 4  ;;  %s18_s13 = int_to_ptr.vmem [resolvable:$true] %s17_s13  ;;  %s349_s15 = int_to_ptr.vmem [resolvable:$true] %s26_s15 }
   0x4   :  { %s249_s18 = scalar_lea.hbm %s395_s0, 128 }
   0x5   :  { %p250_p0 = scmp.ne.s32.totalorder %s395_s0, %s249_s18  ;;  %p253_p1 = scmp.lt.u32.totalorder %s249_s18, %s395_s0 }
   0x7   :  { %p255_p2 = pnand %p253_p1, %p250_p0 }
   0x9   :  { %258 = shalt.err (!%p255_p2)
}
   0xa   :  { %s259_s23 = scalar_lea.vmem %s18_s13, 128  ;;  %p264_p4 = scmp.lt.s32.totalorder %s18_s13, %s18_s13 }
   0xb   :  { %p260_p3 = scmp.ne.s32.totalorder %s18_s13, %s259_s23  ;;  %p265_p5 = scmp.lt.s32.totalorder %s259_s23, %s259_s23 }
   0xd   :  { %p266_p6 = por %p265_p5, %p264_p4 }
   0xf   :  { %p267_p7 = pnand %p266_p6, %p260_p3 }
  0x11   :  { %270 = shalt.err (!%p267_p7)
}
  0x12   :  { %20 = dma.hbm_to_vmem [thread:$0]  %s395_s0, 128, %s18_s13, [#allocation3]  }
  0x13   :  { %s271_s28 = scalar_lea.hbm %s396_s1, 2048 }
  0x14   :  { %p272_p8 = scmp.ne.s32.totalorder %s396_s1, %s271_s28  ;;  %p275_p9 = scmp.lt.u32.totalorder %s271_s28, %s396_s1 }
  0x16   :  { %p277_p10 = pnand %p275_p9, %p272_p8 }
  0x18   :  { %280 = shalt.err (!%p277_p10)
}
  0x19   :  { %s281_s6 = scalar_lea.vmem %s349_s15, 2048  ;;  %p286_p12 = scmp.lt.s32.totalorder %s349_s15, %s349_s15 }
  0x1a   :  { %p282_p11 = scmp.ne.s32.totalorder %s349_s15, %s281_s6  ;;  %p287_p13 = scmp.lt.s32.totalorder %s281_s6, %s281_s6 }
  0x1c   :  { %p288_p0 = por %p287_p13, %p286_p12 }
  0x1e   :  { %p289_p1 = pnand %p288_p0, %p282_p11 }
  0x20   :  { %292 = shalt.err (!%p289_p1)
}
  0x21   :  { %s323_s0 = smov 128   ;;  %s324_s7 = smov 8  }
  0x22   :  { %32 = dma.hbm_to_vmem [thread:$0]  %s396_s1, 2048, %s349_s15, [#allocation6], %s323_s0, %s323_s0, %s324_s7  }
  0x23   :  { %315 = dma.done.wait [#allocation3], 128  }
  0x24   :  { %316 = vsyncadd [#allocation3], 4294967168 }
  0x25   :  { %317 = dma.done.wait [#allocation6], 2048  }
  0x26   :  { %318 = vsyncadd [#allocation6], 4294965248  ;;  %v325_v0 = vmov 0.0|0.0   ;;  %vm326_vm0 = vmmov 0   ;;  %v327_v1 = vmov 0.0   ;;  %v47_v2 = vld [vmem:[#allocation5] sm:$0xff]  ;;  %v43_v24 = vlaneseq }
  0x27   :  { %213 = vmatprep.subr.bf16.mxu0 %v325_v0  ;;  %210 = vmatprep.mubr.msk.f32.mxu0 %vm326_vm0, %v327_v1  ;;  %v48_v3 = vld [vmem:[#allocation5 + $0x8] sm:$0xff]  ;;  %v49_v4 = vld [vmem:[#allocation5 + $0x10] sm:$0xff]  ;;  %v50_v6 = vld [vmem:[#allocation5 + $0x18] sm:$0xff]  ;;  %s328_s11 = smov [#allocation7]  }
  0x28   :  { %v214_v5 = vpack.c.bf16 %v48_v3, %v47_v2  ;;  %v217_v7 = vpack.c.bf16 %v50_v6, %v49_v4  ;;  %v51_v8 = vld [vmem:[#allocation5 + $0x20] sm:$0xff]  ;;  %v52_v9 = vld [vmem:[#allocation5 + $0x28] sm:$0xff]  ;;  %v53_v11 = vld [vmem:[#allocation5 + $0x30] sm:$0xff]  ;;  %v44_v28 = vand.u32 127, %v43_v24  ;;  %s149_s12 = sshll.u32 %s328_s11, 4  ;;  %s150_s12 = int_to_ptr.vmem [resolvable:$true] %s149_s12 }
  0x29   :  { %v220_v10 = vpack.c.bf16 %v52_v9, %v51_v8  ;;  %v54_v12 = vld [vmem:[#allocation5 + $0x38] sm:$0xff]  ;;  %v55_v14 = vld [vmem:[#allocation5 + $0x40] sm:$0xff]  ;;  %v56_v15 = vld [vmem:[#allocation5 + $0x48] sm:$0xff]  ;;  %s293_s13 = scalar_lea.vmem %s150_s12, 128  ;;  %p298_p3 = scmp.lt.s32.totalorder %s150_s12, %s150_s12 }
  0x2a   :  { %215 = vmatpush3.bf16.msra.mxu0 %v214_v5  ;;  %v223_v13 = vpack.c.bf16 %v54_v12, %v53_v11  ;;  %v226_v16 = vpack.c.bf16 %v56_v15, %v55_v14  ;;  %v57_v17 = vld [vmem:[#allocation5 + $0x50] sm:$0xff]  ;;  %v58_v18 = vld [vmem:[#allocation5 + $0x58] sm:$0xff]  ;;  %v59_v21 = vld [vmem:[#allocation5 + $0x60] sm:$0xff]  ;;  %vm45_vm1 = vcmp.lt.s32.totalorder %v44_v28, 32  ;;  %p294_p2 = scmp.ne.s32.totalorder %s150_s12, %s293_s13  ;;  %p299_p4 = scmp.lt.s32.totalorder %s293_s13, %s293_s13 }
  0x2b   :  { %216 = vmatprep.subr.bf16.mxu0 %v325_v0  ;;  %v41_v19 = vld [vmem:[#allocation2] sm:$0xff]  ;;  %v229_v20 = vpack.c.bf16 %v58_v18, %v57_v17  ;;  %v60_v22 = vld [vmem:[#allocation5 + $0x68] sm:$0xff]  ;;  %v61_v25 = vld [vmem:[#allocation5 + $0x70] sm:$0xff] }
  0x2c   :  { %245 = vtanh.f32 %v41_v19  ;;  %v232_v23 = vpack.c.bf16 %v60_v22, %v59_v21  ;;  %v62_v26 = vld [vmem:[#allocation5 + $0x78] sm:$0xff]  ;;  %p300_p5 = por %p299_p4, %p298_p3 }
  0x2d   :  { %v235_v27 = vpack.c.bf16 %v62_v26, %v61_v25  ;;  %v159_v30 = vld [vmem:[%s397_s2] ss:$0 sm:$0xff] }
  0x2e   :  { %218 = vmatpush3.bf16.msra.mxu0 %v217_v7  ;;  %p301_p6 = pnand %p300_p5, %p294_p2 }
  0x2f   :  { %219 = vmatprep.subr.bf16.mxu0 %v325_v0 }
  0x32   :  { %221 = vmatpush3.bf16.msra.mxu0 %v220_v10 }
  0x33   :  { %222 = vmatprep.subr.bf16.mxu0 %v325_v0 }
  0x36   :  { %224 = vmatpush3.bf16.msra.mxu0 %v223_v13  ;;  %v246_v29 = vpop.eup %245 }
  0x37   :  { %225 = vmatprep.subr.bf16.mxu0 %v325_v0 }
  0x3a   :  { %227 = vmatpush3.bf16.msra.mxu0 %v226_v16 }
  0x3b   :  { %228 = vmatprep.subr.bf16.mxu0 %v325_v0 }
  0x3e   :  { %230 = vmatpush3.bf16.msra.mxu0 %v229_v20 }
  0x3f   :  { %231 = vmatprep.subr.bf16.mxu0 %v325_v0 }
  0x42   :  { %233 = vmatpush3.bf16.msra.mxu0 %v232_v23 }
  0x43   :  { %234 = vmatprep.subr.bf16.mxu0 %v325_v0 }
  0x46   :  { %236 = vmatpush3.bf16.msra.mxu0 %v235_v27 }
  0x49   :  { %211 = vmatmul.mubr.msk.f32.vlgmr.msra.gmra.mrb[0].mxu0 %vm45_vm1, %v246_v29 }
 0x11c   :  { %v136_v31 = vpop.f32.mrb[0].mxu0 }
 0x11d   :  { %v137_v32 = vadd.f32 %v159_v30, %v136_v31  ;;  %v212_v33 = vpop.f32.mrb[1].mxu0 }
 0x11f   :  { %247 = vtanh.f32 %v137_v32 }
 0x129   :  { %v248_v34 = vpop.eup %247 }
 0x12a   :  { %v141_v35 = vadd.f32 %v248_v34, %v41_v19 }
 0x12c   :  { %142 = vst [vmem:[#allocation7] sm:$0xff] %v141_v35 }
 0x12d   :  { %304 = shalt.err (!%p301_p6)
}
 0x12e   :  { %s305_s2 = scalar_lea.hbm %s398_s3, 128 }
 0x12f   :  { %p306_p7 = scmp.ne.s32.totalorder %s398_s3, %s305_s2  ;;  %p309_p8 = scmp.lt.u32.totalorder %s305_s2, %s398_s3 }
 0x131   :  { %p311_p9 = pnand %p309_p8, %p306_p7 }
 0x133   :  { %314 = shalt.err (!%p311_p9)
}
 0x134   :  { %152 = dma.vmem_to_hbm [thread:$0]  %s150_s12, 128, %s398_s3, [#allocation4]  }
 0x135   :  { %319 = dma.done.wait [#allocation4], 128  }
 0x136   :  { %320 = vsyncadd [#allocation4], 4294967168 }
 0x137   :  { %156 = vsyncpa [#allocation3], 1 }
 0x138   :  { %157 = vsyncpa [#allocation6], 1 }
 0x139   :  { %158 = vsyncpa [#allocation4], 1 }

</bundles_post_ra>
